<compile_context>
chip_gen: v7x
topology: tpu7x:2x2x1
jax: 0.10.0
libtpu: 0.0.40
codegen_flags: <defaults>
</compile_context>

<pallas_src>
import functools

import jax
import jax.numpy as jnp
from jax.experimental import pallas as pl
from jax.experimental.pallas import tpu as pltpu


def _gru_generator_kernel(
    x_ref,      # (Bp, N)    time-constant random input (batch padded to 8)
    wi_ref,     # (N, 3H)    input->gate weights  [r | z | n], pre-transposed, lane-packed
    wh_ref,     # (H, 3H)    hidden->gate weights [r | z | n], pre-transposed, lane-packed
    brzn_ref,   # (1, 3H)    [b_ir+b_hr | b_iz+b_hz | b_in]
    bhn_ref,    # (1, H)     b_hn (must stay separate: it is gated by r)
    wo_ref,     # (H, O)     h2o weight, pre-transposed
    bo_ref,     # (1, O)     h2o bias
    out_ref,    # (T*Bp, O)  softmax probabilities, time-major row blocks
    *,
    seq_len: int,
):
    H = wh_ref.shape[0]

    x = x_ref[...]                          # (Bp, N)
    wh = wh_ref[...]                        # (H, 3H), loaded once, lives in vregs
    b_hn = bhn_ref[...]                     # (1, H)

    # Hoisted, loop-invariant input-side gate pre-activations (one matmul).
    pre = jnp.dot(x, wi_ref[...], preferred_element_type=jnp.float32) + brzn_ref[...]
    pre_r = pre[:, 0:H]
    pre_z = pre[:, H:2 * H]
    pre_n = pre[:, 2 * H:3 * H]

    # ---- t = 0: h0 == 0, so the recurrent matmul vanishes exactly. ---------
    r = jax.nn.sigmoid(pre_r)
    z = jax.nn.sigmoid(pre_z)
    n = jnp.tanh(pre_n + r * b_hn)
    h = (1.0 - z) * n                       # (Bp, H)
    hs = [h]

    # ---- t = 1 .. T-1: statically unrolled recurrence (T is small). --------
    for _ in range(seq_len - 1):
        gates_h = jnp.dot(h, wh, preferred_element_type=jnp.float32)   # (Bp, 3H)
        r = jax.nn.sigmoid(pre_r + gates_h[:, 0:H])
        z = jax.nn.sigmoid(pre_z + gates_h[:, H:2 * H])
        n = jnp.tanh(pre_n + r * (gates_h[:, 2 * H:3 * H] + b_hn))
        h = (1.0 - z) * n + z * h
        hs.append(h)

    # ---- single fused h2o projection + numerically-stable softmax ----------
    hs_all = jnp.concatenate(hs, axis=0)    # (T*Bp, H), time-major row blocks
    logits = jnp.dot(hs_all, wo_ref[...], preferred_element_type=jnp.float32) + bo_ref[...]
    m = jnp.max(logits, axis=-1, keepdims=True)
    e = jnp.exp(logits - m)
    probs = e * pl.reciprocal(jnp.sum(e, axis=-1, keepdims=True), approx=False)
    out_ref[...] = probs.astype(out_ref.dtype)


def _pack_params(params):
    """Lane-pack per-gate weights and fold/concat biases."""
    wi = jnp.concatenate([params["wir"], params["wiz"], params["win"]], axis=1)  # (N, 3H)
    wh = jnp.concatenate([params["whr"], params["whz"], params["whn"]], axis=1)  # (H, 3H)
    b_rzn = jnp.concatenate(
        [
            params["bir"] + params["bhr"],   # r gate combined bias
            params["biz"] + params["bhz"],   # z gate combined bias
            params["bin"],                   # n gate input-side bias
        ],
        axis=1,
    )                                                                            # (1, 3H)
    return wi, wh, b_rzn, params["bhn"], params["wo"], params["bo"]


def generator_forward(x2d, params, seq_len):
    """x2d: (B, N) random input (the PyTorch .expand makes it constant over time).
    Returns softmax probabilities of shape (B, seq_len, O)."""
    B, N = x2d.shape
    O = params["wo"].shape[1]

    BP = 8  # pad batch to a full sublane group; padded rows are sliced off.
    x_pad = jnp.zeros((BP, N), x2d.dtype).at[:B, :].set(x2d)

    wi, wh, b_rzn, b_hn, wo, bo = _pack_params(params)

    kernel = functools.partial(_gru_generator_kernel, seq_len=seq_len)

    vmem = pltpu.MemorySpace.VMEM
    out_flat = pl.pallas_call(
        kernel,
        out_shape=jax.ShapeDtypeStruct((seq_len * BP, O), jnp.float32),
        in_specs=[pl.BlockSpec(memory_space=vmem)] * 7,
        out_specs=pl.BlockSpec(memory_space=vmem),
    )(x_pad, wi, wh, b_rzn, b_hn, wo, bo)

    # (T*Bp, O) time-major row blocks -> (B, T, O) batch_first, matching PyTorch.
    out_tbo = out_flat.reshape(seq_len, BP, O)[:, :B, :]
    return jnp.transpose(out_tbo, (1, 0, 2))


def _reference_forward(x2d, params, seq_len):
    """Pure-JAX reference GRU + linear + softmax (for correctness check)."""
    B = x2d.shape[0]
    H = params["whr"].shape[0]

    def step(h, _):
        i_r = x2d @ params["wir"] + params["bir"]
        i_z = x2d @ params["wiz"] + params["biz"]
        i_n = x2d @ params["win"] + params["bin"]
        h_r = h @ params["whr"] + params["bhr"]
        h_z = h @ params["whz"] + params["bhz"]
        h_n = h @ params["whn"] + params["bhn"]
        r = jax.nn.sigmoid(i_r + h_r)
        z = jax.nn.sigmoid(i_z + h_z)
        n = jnp.tanh(i_n + r * h_n)
        h_new = (1.0 - z) * n + z * h
        logits = h_new @ params["wo"] + params["bo"]
        return h_new, jax.nn.softmax(logits, axis=-1)

    h0 = jnp.zeros((B, H), jnp.float32)
    _, outs = jax.lax.scan(step, h0, None, length=seq_len)  # (T, B, O)
    return jnp.transpose(outs, (1, 0, 2))


def init_params(key, num_neurons, hidden_size, output_size):
    """Deterministic PyTorch-style uniform(-1/sqrt(H), 1/sqrt(H)) init.
    GRU weights stored pre-split by gate (r, z, n) and pre-transposed."""
    H, N, O = hidden_size, num_neurons, output_size
    bound = 1.0 / jnp.sqrt(jnp.float32(H))
    keys = jax.random.split(key, 16)
    u = lambda k, shape: jax.random.uniform(k, shape, jnp.float32, -bound, bound)
    return {
        "wir": u(keys[0], (N, H)), "wiz": u(keys[1], (N, H)), "win": u(keys[2], (N, H)),
        "whr": u(keys[3], (H, H)), "whz": u(keys[4], (H, H)), "whn": u(keys[5], (H, H)),
        "bir": u(keys[6], (1, H)), "biz": u(keys[7], (1, H)), "bin": u(keys[8], (1, H)),
        "bhr": u(keys[9], (1, H)), "bhz": u(keys[10], (1, H)), "bhn": u(keys[11], (1, H)),
        "wo": u(keys[12], (H, O)), "bo": u(keys[13], (1, O)),
    }


if __name__ == "__main__":
    # Module hyperparameters (small, consistent with Generator.__init__ / forward)
    BATCH_SIZE = 4
    NUM_NEURONS = 16     # GRU input feature size
    HIDDEN_SIZE = 32
    CHARMAP_LEN = 32     # output_size
    SEQ_LEN = 8
    # TODO(synk): nn.GRU inter-layer dropout is a no-op here (layers=1, inference) — not modeled.

    key = jax.random.PRNGKey(0)
    k_param, k_input = jax.random.split(key)
    params = init_params(k_param, NUM_NEURONS, HIDDEN_SIZE, CHARMAP_LEN)

    # rand_input = randn([B, 1, N]).expand([B, T, N]) -> constant over time,
    # so the kernel only needs the (B, N) slice.
    rand_input = jax.random.normal(k_input, (BATCH_SIZE, 1, NUM_NEURONS), jnp.float32)
    x2d = rand_input[:, 0, :]

    out = generator_forward(x2d, params, SEQ_LEN)
    out = jax.block_until_ready(out)

    ref = _reference_forward(x2d, params, SEQ_LEN)
    assert out.shape == (BATCH_SIZE, SEQ_LEN, CHARMAP_LEN)
    assert jnp.allclose(out, ref, atol=1e-5, rtol=1e-5), "mismatch vs JAX reference"
    # rows of a softmax sum to 1
    assert jnp.allclose(jnp.sum(out, axis=-1), 1.0, atol=1e-5)

    print("KERNEL_OK")
</pallas_src>

<mosaic_0001>
module attributes {stable_mosaic.version = 11 : i64} {
  func.func @_gru_generator_kernel(%arg0: memref<8x16xf32, #tpu.memory_space<vmem>>, %arg1: memref<16x96xf32, #tpu.memory_space<vmem>>, %arg2: memref<32x96xf32, #tpu.memory_space<vmem>>, %arg3: memref<1x96xf32, #tpu.memory_space<vmem>>, %arg4: memref<1x32xf32, #tpu.memory_space<vmem>>, %arg5: memref<32x32xf32, #tpu.memory_space<vmem>>, %arg6: memref<1x32xf32, #tpu.memory_space<vmem>>, %arg7: memref<64x32xf32, #tpu.memory_space<vmem>>) attributes {dimension_semantics = [], scalar_prefetch = 0 : i64, scratch_operands = 0 : i64, tpu.core_type = #tpu.core_type<tc>} {
    %c0 = arith.constant 0 : index
    %c0_0 = arith.constant 0 : index
    %0 = vector.load %arg0[%c0, %c0_0] : memref<8x16xf32, #tpu.memory_space<vmem>>, vector<8x16xf32>
    %c0_1 = arith.constant 0 : index
    %c0_2 = arith.constant 0 : index
    %1 = vector.load %arg2[%c0_1, %c0_2] : memref<32x96xf32, #tpu.memory_space<vmem>>, vector<32x96xf32>
    %c0_3 = arith.constant 0 : index
    %c0_4 = arith.constant 0 : index
    %2 = vector.load %arg4[%c0_3, %c0_4] : memref<1x32xf32, #tpu.memory_space<vmem>>, vector<1x32xf32>
    %c0_5 = arith.constant 0 : index
    %c0_6 = arith.constant 0 : index
    %3 = vector.load %arg1[%c0_5, %c0_6] : memref<16x96xf32, #tpu.memory_space<vmem>>, vector<16x96xf32>
    %cst = arith.constant dense<0.000000e+00> : vector<8x96xf32>
    %4 = tpu.matmul %0, %3, %cst {dimension_numbers = #tpu.dot_dimension_numbers<[1], [0], [0], [1], [0, 0, 1, 1], [], []>} : vector<8x16xf32>, vector<16x96xf32>, vector<8x96xf32> -> vector<8x96xf32>
    %c0_7 = arith.constant 0 : index
    %c0_8 = arith.constant 0 : index
    %5 = vector.load %arg3[%c0_7, %c0_8] : memref<1x96xf32, #tpu.memory_space<vmem>>, vector<1x96xf32>
    %6 = vector.broadcast %5 : vector<1x96xf32> to vector<8x96xf32>
    %7 = arith.addf %4, %6 : vector<8x96xf32>
    %8 = vector.extract_strided_slice %7 {offsets = [0, 0], sizes = [8, 32], strides = [1, 1]} : vector<8x96xf32> to vector<8x32xf32>
    %9 = vector.extract_strided_slice %7 {offsets = [0, 32], sizes = [8, 32], strides = [1, 1]} : vector<8x96xf32> to vector<8x32xf32>
    %10 = vector.extract_strided_slice %7 {offsets = [0, 64], sizes = [8, 32], strides = [1, 1]} : vector<8x96xf32> to vector<8x32xf32>
    %11 = arith.negf %8 : vector<8x32xf32>
    %12 = math.exp %11 : vector<8x32xf32>
    %cst_9 = arith.constant 1.000000e+00 : f32
    %13 = vector.broadcast %cst_9 : f32 to vector<8x32xf32>
    %14 = arith.addf %13, %12 : vector<8x32xf32>
    %15 = arith.divf %13, %14 : vector<8x32xf32>
    %16 = arith.negf %9 : vector<8x32xf32>
    %17 = math.exp %16 : vector<8x32xf32>
    %cst_10 = arith.constant 1.000000e+00 : f32
    %18 = vector.broadcast %cst_10 : f32 to vector<8x32xf32>
    %19 = arith.addf %18, %17 : vector<8x32xf32>
    %20 = arith.divf %18, %19 : vector<8x32xf32>
    %21 = vector.broadcast %2 : vector<1x32xf32> to vector<8x32xf32>
    %22 = arith.mulf %15, %21 : vector<8x32xf32>
    %23 = arith.addf %10, %22 : vector<8x32xf32>
    %24 = math.tanh %23 : vector<8x32xf32>
    %cst_11 = arith.constant 1.000000e+00 : f32
    %25 = vector.broadcast %cst_11 : f32 to vector<8x32xf32>
    %26 = arith.subf %25, %20 : vector<8x32xf32>
    %27 = arith.mulf %26, %24 : vector<8x32xf32>
    %cst_12 = arith.constant dense<0.000000e+00> : vector<8x96xf32>
    %28 = tpu.matmul %27, %1, %cst_12 {dimension_numbers = #tpu.dot_dimension_numbers<[1], [0], [0], [1], [0, 0, 1, 1], [], []>} : vector<8x32xf32>, vector<32x96xf32>, vector<8x96xf32> -> vector<8x96xf32>
    %29 = vector.extract_strided_slice %28 {offsets = [0, 0], sizes = [8, 32], strides = [1, 1]} : vector<8x96xf32> to vector<8x32xf32>
    %30 = arith.addf %8, %29 : vector<8x32xf32>
    %31 = arith.negf %30 : vector<8x32xf32>
    %32 = math.exp %31 : vector<8x32xf32>
    %cst_13 = arith.constant 1.000000e+00 : f32
    %33 = vector.broadcast %cst_13 : f32 to vector<8x32xf32>
    %34 = arith.addf %33, %32 : vector<8x32xf32>
    %35 = arith.divf %33, %34 : vector<8x32xf32>
    %36 = vector.extract_strided_slice %28 {offsets = [0, 32], sizes = [8, 32], strides = [1, 1]} : vector<8x96xf32> to vector<8x32xf32>
    %37 = arith.addf %9, %36 : vector<8x32xf32>
    %38 = arith.negf %37 : vector<8x32xf32>
    %39 = math.exp %38 : vector<8x32xf32>
    %cst_14 = arith.constant 1.000000e+00 : f32
    %40 = vector.broadcast %cst_14 : f32 to vector<8x32xf32>
    %41 = arith.addf %40, %39 : vector<8x32xf32>
    %42 = arith.divf %40, %41 : vector<8x32xf32>
    %43 = vector.extract_strided_slice %28 {offsets = [0, 64], sizes = [8, 32], strides = [1, 1]} : vector<8x96xf32> to vector<8x32xf32>
    %44 = vector.broadcast %2 : vector<1x32xf32> to vector<8x32xf32>
    %45 = arith.addf %43, %44 : vector<8x32xf32>
    %46 = arith.mulf %35, %45 : vector<8x32xf32>
    %47 = arith.addf %10, %46 : vector<8x32xf32>
    %48 = math.tanh %47 : vector<8x32xf32>
    %cst_15 = arith.constant 1.000000e+00 : f32
    %49 = vector.broadcast %cst_15 : f32 to vector<8x32xf32>
    %50 = arith.subf %49, %42 : vector<8x32xf32>
    %51 = arith.mulf %50, %48 : vector<8x32xf32>
    %52 = arith.mulf %42, %27 : vector<8x32xf32>
    %53 = arith.addf %51, %52 : vector<8x32xf32>
    %cst_16 = arith.constant dense<0.000000e+00> : vector<8x96xf32>
    %54 = tpu.matmul %53, %1, %cst_16 {dimension_numbers = #tpu.dot_dimension_numbers<[1], [0], [0], [1], [0, 0, 1, 1], [], []>} : vector<8x32xf32>, vector<32x96xf32>, vector<8x96xf32> -> vector<8x96xf32>
    %55 = vector.extract_strided_slice %54 {offsets = [0, 0], sizes = [8, 32], strides = [1, 1]} : vector<8x96xf32> to vector<8x32xf32>
    %56 = arith.addf %8, %55 : vector<8x32xf32>
    %57 = arith.negf %56 : vector<8x32xf32>
    %58 = math.exp %57 : vector<8x32xf32>
    %cst_17 = arith.constant 1.000000e+00 : f32
    %59 = vector.broadcast %cst_17 : f32 to vector<8x32xf32>
    %60 = arith.addf %59, %58 : vector<8x32xf32>
    %61 = arith.divf %59, %60 : vector<8x32xf32>
    %62 = vector.extract_strided_slice %54 {offsets = [0, 32], sizes = [8, 32], strides = [1, 1]} : vector<8x96xf32> to vector<8x32xf32>
    %63 = arith.addf %9, %62 : vector<8x32xf32>
    %64 = arith.negf %63 : vector<8x32xf32>
    %65 = math.exp %64 : vector<8x32xf32>
    %cst_18 = arith.constant 1.000000e+00 : f32
    %66 = vector.broadcast %cst_18 : f32 to vector<8x32xf32>
    %67 = arith.addf %66, %65 : vector<8x32xf32>
    %68 = arith.divf %66, %67 : vector<8x32xf32>
    %69 = vector.extract_strided_slice %54 {offsets = [0, 64], sizes = [8, 32], strides = [1, 1]} : vector<8x96xf32> to vector<8x32xf32>
    %70 = vector.broadcast %2 : vector<1x32xf32> to vector<8x32xf32>
    %71 = arith.addf %69, %70 : vector<8x32xf32>
    %72 = arith.mulf %61, %71 : vector<8x32xf32>
    %73 = arith.addf %10, %72 : vector<8x32xf32>
    %74 = math.tanh %73 : vector<8x32xf32>
    %cst_19 = arith.constant 1.000000e+00 : f32
    %75 = vector.broadcast %cst_19 : f32 to vector<8x32xf32>
    %76 = arith.subf %75, %68 : vector<8x32xf32>
    %77 = arith.mulf %76, %74 : vector<8x32xf32>
    %78 = arith.mulf %68, %53 : vector<8x32xf32>
    %79 = arith.addf %77, %78 : vector<8x32xf32>
    %cst_20 = arith.constant dense<0.000000e+00> : vector<8x96xf32>
    %80 = tpu.matmul %79, %1, %cst_20 {dimension_numbers = #tpu.dot_dimension_numbers<[1], [0], [0], [1], [0, 0, 1, 1], [], []>} : vector<8x32xf32>, vector<32x96xf32>, vector<8x96xf32> -> vector<8x96xf32>
    %81 = vector.extract_strided_slice %80 {offsets = [0, 0], sizes = [8, 32], strides = [1, 1]} : vector<8x96xf32> to vector<8x32xf32>
    %82 = arith.addf %8, %81 : vector<8x32xf32>
    %83 = arith.negf %82 : vector<8x32xf32>
    %84 = math.exp %83 : vector<8x32xf32>
    %cst_21 = arith.constant 1.000000e+00 : f32
    %85 = vector.broadcast %cst_21 : f32 to vector<8x32xf32>
    %86 = arith.addf %85, %84 : vector<8x32xf32>
    %87 = arith.divf %85, %86 : vector<8x32xf32>
    %88 = vector.extract_strided_slice %80 {offsets = [0, 32], sizes = [8, 32], strides = [1, 1]} : vector<8x96xf32> to vector<8x32xf32>
    %89 = arith.addf %9, %88 : vector<8x32xf32>
    %90 = arith.negf %89 : vector<8x32xf32>
    %91 = math.exp %90 : vector<8x32xf32>
    %cst_22 = arith.constant 1.000000e+00 : f32
    %92 = vector.broadcast %cst_22 : f32 to vector<8x32xf32>
    %93 = arith.addf %92, %91 : vector<8x32xf32>
    %94 = arith.divf %92, %93 : vector<8x32xf32>
    %95 = vector.extract_strided_slice %80 {offsets = [0, 64], sizes = [8, 32], strides = [1, 1]} : vector<8x96xf32> to vector<8x32xf32>
    %96 = vector.broadcast %2 : vector<1x32xf32> to vector<8x32xf32>
    %97 = arith.addf %95, %96 : vector<8x32xf32>
    %98 = arith.mulf %87, %97 : vector<8x32xf32>
    %99 = arith.addf %10, %98 : vector<8x32xf32>
    %100 = math.tanh %99 : vector<8x32xf32>
    %cst_23 = arith.constant 1.000000e+00 : f32
    %101 = vector.broadcast %cst_23 : f32 to vector<8x32xf32>
    %102 = arith.subf %101, %94 : vector<8x32xf32>
    %103 = arith.mulf %102, %100 : vector<8x32xf32>
    %104 = arith.mulf %94, %79 : vector<8x32xf32>
    %105 = arith.addf %103, %104 : vector<8x32xf32>
    %cst_24 = arith.constant dense<0.000000e+00> : vector<8x96xf32>
    %106 = tpu.matmul %105, %1, %cst_24 {dimension_numbers = #tpu.dot_dimension_numbers<[1], [0], [0], [1], [0, 0, 1, 1], [], []>} : vector<8x32xf32>, vector<32x96xf32>, vector<8x96xf32> -> vector<8x96xf32>
    %107 = vector.extract_strided_slice %106 {offsets = [0, 0], sizes = [8, 32], strides = [1, 1]} : vector<8x96xf32> to vector<8x32xf32>
    %108 = arith.addf %8, %107 : vector<8x32xf32>
    %109 = arith.negf %108 : vector<8x32xf32>
    %110 = math.exp %109 : vector<8x32xf32>
    %cst_25 = arith.constant 1.000000e+00 : f32
    %111 = vector.broadcast %cst_25 : f32 to vector<8x32xf32>
    %112 = arith.addf %111, %110 : vector<8x32xf32>
    %113 = arith.divf %111, %112 : vector<8x32xf32>
    %114 = vector.extract_strided_slice %106 {offsets = [0, 32], sizes = [8, 32], strides = [1, 1]} : vector<8x96xf32> to vector<8x32xf32>
    %115 = arith.addf %9, %114 : vector<8x32xf32>
    %116 = arith.negf %115 : vector<8x32xf32>
    %117 = math.exp %116 : vector<8x32xf32>
    %cst_26 = arith.constant 1.000000e+00 : f32
    %118 = vector.broadcast %cst_26 : f32 to vector<8x32xf32>
    %119 = arith.addf %118, %117 : vector<8x32xf32>
    %120 = arith.divf %118, %119 : vector<8x32xf32>
    %121 = vector.extract_strided_slice %106 {offsets = [0, 64], sizes = [8, 32], strides = [1, 1]} : vector<8x96xf32> to vector<8x32xf32>
    %122 = vector.broadcast %2 : vector<1x32xf32> to vector<8x32xf32>
    %123 = arith.addf %121, %122 : vector<8x32xf32>
    %124 = arith.mulf %113, %123 : vector<8x32xf32>
    %125 = arith.addf %10, %124 : vector<8x32xf32>
    %126 = math.tanh %125 : vector<8x32xf32>
    %cst_27 = arith.constant 1.000000e+00 : f32
    %127 = vector.broadcast %cst_27 : f32 to vector<8x32xf32>
    %128 = arith.subf %127, %120 : vector<8x32xf32>
    %129 = arith.mulf %128, %126 : vector<8x32xf32>
    %130 = arith.mulf %120, %105 : vector<8x32xf32>
    %131 = arith.addf %129, %130 : vector<8x32xf32>
    %cst_28 = arith.constant dense<0.000000e+00> : vector<8x96xf32>
    %132 = tpu.matmul %131, %1, %cst_28 {dimension_numbers = #tpu.dot_dimension_numbers<[1], [0], [0], [1], [0, 0, 1, 1], [], []>} : vector<8x32xf32>, vector<32x96xf32>, vector<8x96xf32> -> vector<8x96xf32>
    %133 = vector.extract_strided_slice %132 {offsets = [0, 0], sizes = [8, 32], strides = [1, 1]} : vector<8x96xf32> to vector<8x32xf32>
    %134 = arith.addf %8, %133 : vector<8x32xf32>
    %135 = arith.negf %134 : vector<8x32xf32>
    %136 = math.exp %135 : vector<8x32xf32>
    %cst_29 = arith.constant 1.000000e+00 : f32
    %137 = vector.broadcast %cst_29 : f32 to vector<8x32xf32>
    %138 = arith.addf %137, %136 : vector<8x32xf32>
    %139 = arith.divf %137, %138 : vector<8x32xf32>
    %140 = vector.extract_strided_slice %132 {offsets = [0, 32], sizes = [8, 32], strides = [1, 1]} : vector<8x96xf32> to vector<8x32xf32>
    %141 = arith.addf %9, %140 : vector<8x32xf32>
    %142 = arith.negf %141 : vector<8x32xf32>
    %143 = math.exp %142 : vector<8x32xf32>
    %cst_30 = arith.constant 1.000000e+00 : f32
    %144 = vector.broadcast %cst_30 : f32 to vector<8x32xf32>
    %145 = arith.addf %144, %143 : vector<8x32xf32>
    %146 = arith.divf %144, %145 : vector<8x32xf32>
    %147 = vector.extract_strided_slice %132 {offsets = [0, 64], sizes = [8, 32], strides = [1, 1]} : vector<8x96xf32> to vector<8x32xf32>
    %148 = vector.broadcast %2 : vector<1x32xf32> to vector<8x32xf32>
    %149 = arith.addf %147, %148 : vector<8x32xf32>
    %150 = arith.mulf %139, %149 : vector<8x32xf32>
    %151 = arith.addf %10, %150 : vector<8x32xf32>
    %152 = math.tanh %151 : vector<8x32xf32>
    %cst_31 = arith.constant 1.000000e+00 : f32
    %153 = vector.broadcast %cst_31 : f32 to vector<8x32xf32>
    %154 = arith.subf %153, %146 : vector<8x32xf32>
    %155 = arith.mulf %154, %152 : vector<8x32xf32>
    %156 = arith.mulf %146, %131 : vector<8x32xf32>
    %157 = arith.addf %155, %156 : vector<8x32xf32>
    %cst_32 = arith.constant dense<0.000000e+00> : vector<8x96xf32>
    %158 = tpu.matmul %157, %1, %cst_32 {dimension_numbers = #tpu.dot_dimension_numbers<[1], [0], [0], [1], [0, 0, 1, 1], [], []>} : vector<8x32xf32>, vector<32x96xf32>, vector<8x96xf32> -> vector<8x96xf32>
    %159 = vector.extract_strided_slice %158 {offsets = [0, 0], sizes = [8, 32], strides = [1, 1]} : vector<8x96xf32> to vector<8x32xf32>
    %160 = arith.addf %8, %159 : vector<8x32xf32>
    %161 = arith.negf %160 : vector<8x32xf32>
    %162 = math.exp %161 : vector<8x32xf32>
    %cst_33 = arith.constant 1.000000e+00 : f32
    %163 = vector.broadcast %cst_33 : f32 to vector<8x32xf32>
    %164 = arith.addf %163, %162 : vector<8x32xf32>
    %165 = arith.divf %163, %164 : vector<8x32xf32>
    %166 = vector.extract_strided_slice %158 {offsets = [0, 32], sizes = [8, 32], strides = [1, 1]} : vector<8x96xf32> to vector<8x32xf32>
    %167 = arith.addf %9, %166 : vector<8x32xf32>
    %168 = arith.negf %167 : vector<8x32xf32>
    %169 = math.exp %168 : vector<8x32xf32>
    %cst_34 = arith.constant 1.000000e+00 : f32
    %170 = vector.broadcast %cst_34 : f32 to vector<8x32xf32>
    %171 = arith.addf %170, %169 : vector<8x32xf32>
    %172 = arith.divf %170, %171 : vector<8x32xf32>
    %173 = vector.extract_strided_slice %158 {offsets = [0, 64], sizes = [8, 32], strides = [1, 1]} : vector<8x96xf32> to vector<8x32xf32>
    %174 = vector.broadcast %2 : vector<1x32xf32> to vector<8x32xf32>
    %175 = arith.addf %173, %174 : vector<8x32xf32>
    %176 = arith.mulf %165, %175 : vector<8x32xf32>
    %177 = arith.addf %10, %176 : vector<8x32xf32>
    %178 = math.tanh %177 : vector<8x32xf32>
    %cst_35 = arith.constant 1.000000e+00 : f32
    %179 = vector.broadcast %cst_35 : f32 to vector<8x32xf32>
    %180 = arith.subf %179, %172 : vector<8x32xf32>
    %181 = arith.mulf %180, %178 : vector<8x32xf32>
    %182 = arith.mulf %172, %157 : vector<8x32xf32>
    %183 = arith.addf %181, %182 : vector<8x32xf32>
    %cst_36 = arith.constant dense<0.000000e+00> : vector<8x96xf32>
    %184 = tpu.matmul %183, %1, %cst_36 {dimension_numbers = #tpu.dot_dimension_numbers<[1], [0], [0], [1], [0, 0, 1, 1], [], []>} : vector<8x32xf32>, vector<32x96xf32>, vector<8x96xf32> -> vector<8x96xf32>
    %185 = vector.extract_strided_slice %184 {offsets = [0, 0], sizes = [8, 32], strides = [1, 1]} : vector<8x96xf32> to vector<8x32xf32>
    %186 = arith.addf %8, %185 : vector<8x32xf32>
    %187 = arith.negf %186 : vector<8x32xf32>
    %188 = math.exp %187 : vector<8x32xf32>
    %cst_37 = arith.constant 1.000000e+00 : f32
    %189 = vector.broadcast %cst_37 : f32 to vector<8x32xf32>
    %190 = arith.addf %189, %188 : vector<8x32xf32>
    %191 = arith.divf %189, %190 : vector<8x32xf32>
    %192 = vector.extract_strided_slice %184 {offsets = [0, 32], sizes = [8, 32], strides = [1, 1]} : vector<8x96xf32> to vector<8x32xf32>
    %193 = arith.addf %9, %192 : vector<8x32xf32>
    %194 = arith.negf %193 : vector<8x32xf32>
    %195 = math.exp %194 : vector<8x32xf32>
    %cst_38 = arith.constant 1.000000e+00 : f32
    %196 = vector.broadcast %cst_38 : f32 to vector<8x32xf32>
    %197 = arith.addf %196, %195 : vector<8x32xf32>
    %198 = arith.divf %196, %197 : vector<8x32xf32>
    %199 = vector.extract_strided_slice %184 {offsets = [0, 64], sizes = [8, 32], strides = [1, 1]} : vector<8x96xf32> to vector<8x32xf32>
    %200 = vector.broadcast %2 : vector<1x32xf32> to vector<8x32xf32>
    %201 = arith.addf %199, %200 : vector<8x32xf32>
    %202 = arith.mulf %191, %201 : vector<8x32xf32>
    %203 = arith.addf %10, %202 : vector<8x32xf32>
    %204 = math.tanh %203 : vector<8x32xf32>
    %cst_39 = arith.constant 1.000000e+00 : f32
    %205 = vector.broadcast %cst_39 : f32 to vector<8x32xf32>
    %206 = arith.subf %205, %198 : vector<8x32xf32>
    %207 = arith.mulf %206, %204 : vector<8x32xf32>
    %208 = arith.mulf %198, %183 : vector<8x32xf32>
    %209 = arith.addf %207, %208 : vector<8x32xf32>
    %210 = tpu.concatenate %27, %53, %79, %105, %131, %157, %183, %209 in 0 : vector<8x32xf32>, vector<8x32xf32>, vector<8x32xf32>, vector<8x32xf32>, vector<8x32xf32>, vector<8x32xf32>, vector<8x32xf32>, vector<8x32xf32> -> vector<64x32xf32>
    %c0_40 = arith.constant 0 : index
    %c0_41 = arith.constant 0 : index
    %211 = vector.load %arg5[%c0_40, %c0_41] : memref<32x32xf32, #tpu.memory_space<vmem>>, vector<32x32xf32>
    %cst_42 = arith.constant dense<0.000000e+00> : vector<64x32xf32>
    %212 = tpu.matmul %210, %211, %cst_42 {dimension_numbers = #tpu.dot_dimension_numbers<[1], [0], [0], [1], [0, 0, 1, 1], [], []>} : vector<64x32xf32>, vector<32x32xf32>, vector<64x32xf32> -> vector<64x32xf32>
    %c0_43 = arith.constant 0 : index
    %c0_44 = arith.constant 0 : index
    %213 = vector.load %arg6[%c0_43, %c0_44] : memref<1x32xf32, #tpu.memory_space<vmem>>, vector<1x32xf32>
    %214 = vector.broadcast %213 : vector<1x32xf32> to vector<64x32xf32>
    %215 = arith.addf %212, %214 : vector<64x32xf32>
    %cst_45 = arith.constant dense<0xFF800000> : vector<64xf32>
    %216 = vector.multi_reduction <maximumf>, %215, %cst_45 [1] : vector<64x32xf32> to vector<64xf32>
    %217 = vector.shape_cast %216 : vector<64xf32> to vector<64x1xf32>
    %218 = vector.broadcast %217 : vector<64x1xf32> to vector<64x32xf32>
    %219 = arith.subf %215, %218 : vector<64x32xf32>
    %220 = math.exp %219 : vector<64x32xf32>
    %cst_46 = arith.constant dense<0.000000e+00> : vector<64xf32>
    %221 = vector.multi_reduction <add>, %220, %cst_46 [1] : vector<64x32xf32> to vector<64xf32>
    %222 = vector.shape_cast %221 : vector<64xf32> to vector<64x1xf32>
    %223 = tpu.reciprocal %222 : vector<64x1xf32> -> vector<64x1xf32>
    %224 = vector.broadcast %223 : vector<64x1xf32> to vector<64x32xf32>
    %225 = arith.mulf %220, %224 : vector<64x32xf32>
    %c0_47 = arith.constant 0 : index
    %c0_48 = arith.constant 0 : index
    %226 = vector.load %arg7[%c0_47, %c0_48] : memref<64x32xf32, #tpu.memory_space<vmem>>, vector<64x32xf32>
    tpu.vector_store %arg7[%c0_47, %c0_48], %225 {strides = array<i32>} : memref<64x32xf32, #tpu.memory_space<vmem>>, vector<64x32xf32>,
    return
  }
}

</mosaic_0001>

<bundles_post_ra>
// kernel: tpu_custom_call.1
= control target key start
LH: loop header
LB: loop body
LE: loop exit
PB: predicated region body
PF: predicated region fallthrough
CT: control target
= control target key end

     0   :  { %12 = vsyncpa [#allocation3], 0  ;;  %s1864_s0 = inlined_call_operand.hbm [shape: f32[8,16], index: 0, kind: input, shape index: {}]   ;;  %s1865_s1 = inlined_call_operand.hbm [shape: f32[16,96], index: 1, kind: input, shape index: {}]   ;;  %s1866_s2 = inlined_call_operand.hbm [shape: f32[32,96], index: 2, kind: input, shape index: {}]   ;;  %s1867_s3 = inlined_call_operand.vmem [shape: f32[1,96], index: 3, kind: input, shape index: {}]   ;;  %s1868_s4 = inlined_call_operand.vmem [shape: f32[1,32], index: 4, kind: input, shape index: {}]   ;;  %s1869_s5 = inlined_call_operand.hbm [shape: f32[32,32], index: 5, kind: input, shape index: {}]   ;;  %s1870_s6 = inlined_call_operand.vmem [shape: f32[1,32], index: 6, kind: input, shape index: {}]   ;;  %s1871_s7 = inlined_call_operand.vmem [shape: f32[64,32], index: 7, kind: output, shape index: {}]  }
   0x1   :  { %13 = vsyncpa [#allocation5], 0 }
   0x2   :  { %14 = vsyncpa [#allocation8], 0  ;;  %s1554_s24 = smov [#allocation4]   ;;  %s1460_s28 = scalar_lea.hbm %s1865_s1, 256 }
   0x3   :  { %s30_s25 = sshll.u32 %s1554_s24, 4  ;;  %p1461_p0 = scmp.ne.s32.totalorder %s1865_s1, %s1460_s28  ;;  %s31_s25 = int_to_ptr.vmem [resolvable:$true] %s30_s25 }
   0x4   :  { %p1464_p1 = scmp.lt.u32.totalorder %s1460_s28, %s1865_s1 }
   0x6   :  { %p1466_p2 = pnand %p1464_p1, %p1461_p0 }
   0x8   :  { %1469 = shalt.err (!%p1466_p2)
}
   0x9   :  { %s1470_s10 = scalar_lea.vmem %s31_s25, 256  ;;  %p1475_p4 = scmp.lt.s32.totalorder %s31_s25, %s31_s25 }
   0xa   :  { %p1471_p3 = scmp.ne.s32.totalorder %s31_s25, %s1470_s10  ;;  %p1476_p5 = scmp.lt.s32.totalorder %s1470_s10, %s1470_s10 }
   0xc   :  { %p1477_p6 = por %p1476_p5, %p1475_p4 }
   0xe   :  { %p1478_p7 = pnand %p1477_p6, %p1471_p3 }
  0x10   :  { %1481 = shalt.err (!%p1478_p7)
}
  0x11   :  { %s1555_s11 = smov 128   ;;  %s1556_s12 = smov 8  }
  0x12   :  { %36 = dma.hbm_to_vmem [thread:$0]  %s1865_s1, 256, %s31_s25, [#allocation5], %s1555_s11, %s1555_s11, %s1556_s12  }
  0x13   :  { %s1557_s15 = smov [#allocation2]   ;;  %s1558_s17 = smov [#allocation6]  }
  0x14   :  { %s21_s16 = sshll.u32 %s1557_s15, 4  ;;  %s42_s18 = sshll.u32 %s1558_s17, 4  ;;  %s22_s16 = int_to_ptr.vmem [resolvable:$true] %s21_s16  ;;  %s43_s18 = int_to_ptr.vmem [resolvable:$true] %s42_s18 }
  0x15   :  { %s1482_s21 = scalar_lea.hbm %s1864_s0, 128 }
  0x16   :  { %p1483_p8 = scmp.ne.s32.totalorder %s1864_s0, %s1482_s21  ;;  %p1486_p9 = scmp.lt.u32.totalorder %s1482_s21, %s1864_s0 }
  0x18   :  { %p1488_p10 = pnand %p1486_p9, %p1483_p8 }
  0x1a   :  { %1491 = shalt.err (!%p1488_p10)
}
  0x1b   :  { %s1492_s1 = scalar_lea.vmem %s22_s16, 128  ;;  %p1497_p12 = scmp.lt.s32.totalorder %s22_s16, %s22_s16 }
  0x1c   :  { %p1493_p11 = scmp.ne.s32.totalorder %s22_s16, %s1492_s1  ;;  %p1498_p13 = scmp.lt.s32.totalorder %s1492_s1, %s1492_s1 }
  0x1e   :  { %p1499_p0 = por %p1498_p13, %p1497_p12 }
  0x20   :  { %p1500_p1 = pnand %p1499_p0, %p1493_p11 }
  0x22   :  { %1503 = shalt.err (!%p1500_p1)
}
  0x23   :  { %24 = dma.hbm_to_vmem [thread:$0]  %s1864_s0, 128, %s22_s16, [#allocation3]  }
  0x24   :  { %s1504_s30 = scalar_lea.hbm %s1866_s2, 512 }
  0x25   :  { %p1505_p2 = scmp.ne.s32.totalorder %s1866_s2, %s1504_s30  ;;  %p1508_p3 = scmp.lt.u32.totalorder %s1504_s30, %s1866_s2 }
  0x27   :  { %p1510_p4 = pnand %p1508_p3, %p1505_p2 }
  0x29   :  { %1513 = shalt.err (!%p1510_p4)
}
  0x2a   :  { %s1514_s14 = scalar_lea.vmem %s43_s18, 512  ;;  %p1519_p6 = scmp.lt.s32.totalorder %s43_s18, %s43_s18 }
  0x2b   :  { %p1515_p5 = scmp.ne.s32.totalorder %s43_s18, %s1514_s14  ;;  %p1520_p7 = scmp.lt.s32.totalorder %s1514_s14, %s1514_s14 }
  0x2d   :  { %p1521_p8 = por %p1520_p7, %p1519_p6 }
  0x2f   :  { %p1522_p9 = pnand %p1521_p8, %p1515_p5 }
  0x31   :  { %1525 = shalt.err (!%p1522_p9)
}
  0x32   :  { %48 = dma.hbm_to_vmem [thread:$0]  %s1866_s2, 512, %s43_s18, [#allocation5], %s1555_s11, %s1555_s11, %s1556_s12  }
  0x33   :  { %s1559_s16 = smov [#allocation7]   ;;  %s1526_s21 = scalar_lea.hbm %s1869_s5, 512 }
  0x34   :  { %s58_s17 = sshll.u32 %s1559_s16, 4  ;;  %p1527_p10 = scmp.ne.s32.totalorder %s1869_s5, %s1526_s21  ;;  %s59_s17 = int_to_ptr.vmem [resolvable:$true] %s58_s17 }
  0x35   :  { %p1530_p11 = scmp.lt.u32.totalorder %s1526_s21, %s1869_s5 }
  0x37   :  { %p1532_p12 = pnand %p1530_p11, %p1527_p10 }
  0x39   :  { %1535 = shalt.err (!%p1532_p12)
}
  0x3a   :  { %s1536_s1 = scalar_lea.vmem %s59_s17, 512  ;;  %p1541_p0 = scmp.lt.s32.totalorder %s59_s17, %s59_s17 }
  0x3b   :  { %p1537_p13 = scmp.ne.s32.totalorder %s59_s17, %s1536_s1  ;;  %p1542_p1 = scmp.lt.s32.totalorder %s1536_s1, %s1536_s1 }
  0x3d   :  { %p1543_p2 = por %p1542_p1, %p1541_p0 }
  0x3f   :  { %p1544_p3 = pnand %p1543_p2, %p1537_p13 }
  0x41   :  { %1547 = shalt.err (!%p1544_p3)
}
  0x42   :  { %64 = dma.hbm_to_vmem [thread:$0]  %s1869_s5, 512, %s59_s17, [#allocation8], %s1555_s11, %s1555_s11, %s1556_s12  }
  0x43   :  { %1548 = dma.done.wait [#allocation3], 128  }
  0x44   :  { %1549 = vsyncadd [#allocation3], 4294967168 }
  0x45   :  { %1550 = dma.done.wait [#allocation5], 768  }
  0x46   :  { %1551 = vsyncadd [#allocation5], 4294966528 }
  0x47   :  { %1552 = dma.done.wait [#allocation8], 512  }
  0x48   :  { %1553 = vsyncadd [#allocation8], 4294966784  ;;  %v1560_v0 = vmov 0.0|0.0   ;;  %vm1561_vm0 = vmmov 0   ;;  %v1562_v1 = vmov 0.0   ;;  %v85_v2 = vld [vmem:[#allocation4] sm:$0xff] }
  0x49   :  { %1316 = vmatprep.subr.bf16.mxu0 %v1560_v0  ;;  %1216 = vmatprep.mubr.msk.f32.mxu0 %vm1561_vm0, %v1562_v1  ;;  %v86_v3 = vld [vmem:[#allocation4 + $0x8] sm:$0xff]  ;;  %v79_v5 = vld [vmem:[#allocation2] sm:$0xff]  ;;  %vm94_vm1 = vcmask 130048   ;;  %s1563_s27 = smov 64   ;;  %v80_v18 = vld [vmem:[#allocation6] sm:$0xff]  ;;  %vm196_vm2 = vcmask 261120  }
  0x4a   :  { %1319 = vmatprep.subr.bf16.mxu1 %v1560_v0  ;;  %1227 = vmatprep.mubr.msk.f32.mxu1 %vm1561_vm0, %v1562_v1  ;;  %v1317_v4 = vpack.c.bf16 %v86_v3, %v85_v2  ;;  %v1135_v6 = vld [vmem:[%s1867_s3] ss:$0 sm:$0xff]  ;;  %v82_v20 = vld [vmem:[#allocation6 + $0x10] sm:$0xff]  ;;  %v83_v22 = vld [vmem:[#allocation6 + $0x18] sm:$0xff]  ;;  %s1564_s3 = smov 96  }
  0x4b   :  { %v1138_v13 = vld [vmem:[%s1868_s4] ss:$0 sm:$0xff]  ;;  %v1685_v23 = vpack.c.bf16 %v83_v22, %v82_v20 }
  0x4c   :  { %1318 = vmatpush3.bf16.msra.mxu0 %v1317_v4  ;;  %v81_v19 = vld [vmem:[#allocation6 + $0x8] sm:$0xff] }
  0x4d   :  { %1337 = vmatprep.subr.bf16.mxu0 %v1560_v0  ;;  %v1682_v21 = vpack.c.bf16 %v81_v19, %v80_v18 }
  0x4f   :  { %1217 = vmatmul.mubr.msk.f32.vlgmr.msra.gmra.mrb[0].mxu0 %vm94_vm1, %v79_v5  ;;  %1321 = vmatpush3.bf16.msra.mxu1 %v1682_v21 }
  0x50   :  { %1260 = vmatprep.mubr.msk.f32.mxu0 %vm1561_vm0, %v1562_v1  ;;  %1339 = vmatpush3.bf16.msra.mxu0 %v1682_v21 }
  0x51   :  { %1322 = vmatprep.subr.bf16.mxu1 %v1560_v0  ;;  %1340 = vmatprep.subr.bf16.mxu0 %v1560_v0 }
  0x53   :  { %1324 = vmatpush3.bf16.msra.mxu1 %v1685_v23 }
  0x54   :  { %1342 = vmatpush3.bf16.msra.mxu0 %v1685_v23  ;;  %1325 = vmatprep.subr.bf16.mxu1 %v1560_v0 }
  0x55   :  { %1349 = vmatprep.subr.bf16.mxu0 %v1560_v0 }
 0x122   :  { %v164_v7 = vpop.f32.mrb[0].mxu0 }
 0x123   :  { %v1674_v8 = vadd.f32 %v1135_v6, %v164_v7  ;;  %v1218_v9 = vpop.f32.mrb[1].mxu0 }
 0x125   :  { %v1137_v10 = vmul.f32 -1.442695, %v1674_v8 }
 0x127   :  { %1380 = vpow2.f32 %v1137_v10 }
 0x131   :  { %v1381_v11 = vpop.eup %1380 }
 0x132   :  { %v171_v12 = vadd.f32 1.0, %v1381_v11 }
 0x134   :  { %1382 = vrcp.f32 %v171_v12 }
 0x13e   :  { %v1383_v14 = vpop.eup %1382 }
 0x13f   :  { %v180_v15 = vmul.f32 %v1383_v14, %v1138_v13  ;;  %v187_v25 = vsub.f32 1.0, %v1383_v14 }
 0x141   :  { %182 = vrot.lane.b32.xlu0 %v180_v15, %s1563_s27 }
 0x1b3   :  { %v183_v16 = vpop.permute.xlu0 %182 }
 0x1b4   :  { %v185_v17 = vadd.f32 %v183_v16, %v1674_v8 }
 0x1b6   :  { %1384 = vtanh.f32 %v185_v17 }
 0x1c0   :  { %v1385_v24 = vpop.eup %1384 }
 0x1c1   :  { %189 = vrot.lane.b32.xlu0 %v1385_v24, %s1564_s3 }
 0x233   :  { %v190_v26 = vpop.permute.xlu0 %189 }
 0x234   :  { %v192_v27 = vmul.f32 %v190_v26, %v187_v25 }
 0x236   :  { %194 = vrot.lane.b32.xlu1 %v192_v27, %s1564_s3 }
 0x23a   :  { %276 = vrot.lane.b32.xlu1 %v1138_v13, %s1563_s27 }
 0x2a8   :  { %v1697_v28 = vpop.permute.xlu1 %194 }
 0x2a9   :  { %1228 = vmatmul.mubr.msk.f32.vlgmr.msra.gmra.mrb[0].mxu1 %vm196_vm2, %v1697_v28 }
 0x2aa   :  { %1327 = vmatpush3.bf16.msra.mxu1 %v1682_v21  ;;  %1238 = vmatprep.mubr.msk.f32.mxu1 %vm1561_vm0, %v1562_v1 }
 0x2ab   :  { %1328 = vmatprep.subr.bf16.mxu1 %v1560_v0 }
 0x2ac   :  { %v1707_v29 = vpop.permute.xlu1 %276 }
 0x2ae   :  { %1330 = vmatpush3.bf16.msra.mxu1 %v1685_v23 }
 0x2af   :  { %1331 = vmatprep.subr.bf16.mxu1 %v1560_v0 }
 0x37c   :  { %v265_v30 = vpop.f32.mrb[0].mxu1 }
 0x37d   :  { %v1229_v31 = vpop.f32.mrb[1].mxu1  ;;  %v279_v32 = vadd.f32 %v1707_v29, %v265_v30  ;;  %v269_v33 = vadd.f32 %v265_v30, %v1674_v8 }
 0x37f   :  { %281 = vrot.lane.b32.xlu0 %v279_v32, %s1563_s27  ;;  %v1140_v34 = vmul.f32 -1.442695, %v269_v33 }
 0x381   :  { %1386 = vpow2.f32 %v1140_v34 }
 0x38b   :  { %v1387_v35 = vpop.eup %1386 }
 0x38c   :  { %v273_v36 = vadd.f32 1.0, %v1387_v35 }
 0x38e   :  { %1388 = vrcp.f32 %v273_v36 }
 0x398   :  { %v1389_v37 = vpop.eup %1388 }
 0x399   :  { %v291_v43 = vsub.f32 1.0, %v1389_v37  ;;  %v297_v45 = vmul.f32 %v1389_v37, %v192_v27 }
 0x3f1   :  { %v282_v38 = vpop.permute.xlu0 %281 }
 0x3f2   :  { %v284_v39 = vmul.f32 %v1389_v37, %v282_v38 }
 0x3f4   :  { %286 = vrot.lane.b32.xlu1 %v284_v39, %s1563_s27 }
 0x466   :  { %v287_v40 = vpop.permute.xlu1 %286 }
 0x467   :  { %v289_v41 = vadd.f32 %v287_v40, %v1674_v8 }
 0x469   :  { %1390 = vtanh.f32 %v289_v41 }
 0x473   :  { %v1391_v42 = vpop.eup %1390 }
 0x474   :  { %293 = vrot.lane.b32.xlu0 %v1391_v42, %s1564_s3 }
 0x4e6   :  { %v294_v44 = vpop.permute.xlu0 %293 }
 0x4e7   :  { %v296_v46 = vmul.f32 %v294_v44, %v291_v43 }
 0x4e9   :  { %v298_v47 = vadd.f32 %v297_v45, %v296_v46 }
 0x4eb   :  { %300 = vrot.lane.b32.xlu1 %v298_v47, %s1564_s3 }
 0x55d   :  { %v1716_v48 = vpop.permute.xlu1 %300 }
 0x55e   :  { %1239 = vmatmul.mubr.msk.f32.vlgmr.msra.gmra.mrb[2].mxu1 %vm196_vm2, %v1716_v48 }
 0x55f   :  { %1333 = vmatpush3.bf16.msra.mxu1 %v1682_v21  ;;  %1249 = vmatprep.mubr.msk.f32.mxu1 %vm1561_vm0, %v1562_v1 }
 0x560   :  { %1334 = vmatprep.subr.bf16.mxu1 %v1560_v0 }
 0x563   :  { %1336 = vmatpush3.bf16.msra.mxu1 %v1685_v23 }
 0x564   :  { %1343 = vmatprep.subr.bf16.mxu1 %v1560_v0 }
 0x631   :  { %v370_v49 = vpop.f32.mrb[2].mxu1 }
 0x632   :  { %v381_v50 = vadd.f32 %v370_v49, %v1707_v29  ;;  %v1240_v51 = vpop.f32.mrb[3].mxu1  ;;  %v374_v52 = vadd.f32 %v370_v49, %v1674_v8 }
 0x634   :  { %383 = vrot.lane.b32.xlu0 %v381_v50, %s1563_s27  ;;  %v1142_v53 = vmul.f32 -1.442695, %v374_v52 }
 0x636   :  { %1392 = vpow2.f32 %v1142_v53 }
 0x640   :  { %v1393_v54 = vpop.eup %1392 }
 0x641   :  { %v378_v55 = vadd.f32 1.0, %v1393_v54 }
 0x643   :  { %1394 = vrcp.f32 %v378_v55 }
 0x64d   :  { %v1395_v56 = vpop.eup %1394 }
 0x64e   :  { %v393_v62 = vsub.f32 1.0, %v1395_v56  ;;  %v399_v2 = vmul.f32 %v1395_v56, %v298_v47 }
 0x6a6   :  { %v384_v57 = vpop.permute.xlu0 %383 }
 0x6a7   :  { %v386_v58 = vmul.f32 %v1395_v56, %v384_v57 }
 0x6a9   :  { %388 = vrot.lane.b32.xlu1 %v386_v58, %s1563_s27  ;;  %v911_v58 = vld [vmem:[#allocation7] sm:$0xff] }
 0x71b   :  { %v389_v59 = vpop.permute.xlu1 %388 }
 0x71c   :  { %v391_v60 = vadd.f32 %v389_v59, %v1674_v8  ;;  %v912_v59 = vld [vmem:[#allocation7 + $0x8] sm:$0xff] }
 0x71e   :  { %1396 = vtanh.f32 %v391_v60  ;;  %v1361_v60 = vpack.c.bf16 %v912_v59, %v911_v58 }
 0x728   :  { %v1397_v61 = vpop.eup %1396 }
 0x729   :  { %395 = vrot.lane.b32.xlu0 %v1397_v61, %s1564_s3 }
 0x79b   :  { %v396_v63 = vpop.permute.xlu0 %395 }
 0x79c   :  { %v398_v3 = vmul.f32 %v396_v63, %v393_v62 }
 0x79e   :  { %v400_v4 = vadd.f32 %v399_v2, %v398_v3 }
 0x7a0   :  { %402 = vrot.lane.b32.xlu1 %v400_v4, %s1564_s3 }
 0x812   :  { %v1733_v5 = vpop.permute.xlu1 %402 }
 0x813   :  { %1250 = vmatmul.mubr.msk.f32.vlgmr.msra.gmra.mrb[4].mxu1 %vm196_vm2, %v1733_v5 }
 0x814   :  { %1345 = vmatpush3.bf16.msra.mxu1 %v1682_v21  ;;  %1271 = vmatprep.mubr.msk.f32.mxu1 %vm1561_vm0, %v1562_v1 }
 0x815   :  { %1346 = vmatprep.subr.bf16.mxu1 %v1560_v0 }
 0x818   :  { %1348 = vmatpush3.bf16.msra.mxu1 %v1685_v23 }
 0x819   :  { %1355 = vmatprep.subr.bf16.mxu1 %v1560_v0 }
 0x8e6   :  { %v472_v6 = vpop.f32.mrb[4].mxu1 }
 0x8e7   :  { %v483_v7 = vadd.f32 %v472_v6, %v1707_v29  ;;  %v1251_v9 = vpop.f32.mrb[5].mxu1  ;;  %v476_v10 = vadd.f32 %v472_v6, %v1674_v8  ;;  %v913_v6 = vld [vmem:[#allocation7 + $0x10] sm:$0xff] }
 0x8e9   :  { %485 = vrot.lane.b32.xlu0 %v483_v7, %s1563_s27  ;;  %v1144_v11 = vmul.f32 -1.442695, %v476_v10  ;;  %v914_v7 = vld [vmem:[#allocation7 + $0x18] sm:$0xff] }
 0x8ea   :  { %v1365_v9 = vpack.c.bf16 %v914_v7, %v913_v6 }
 0x8eb   :  { %1398 = vpow2.f32 %v1144_v11 }
 0x8f5   :  { %v1399_v12 = vpop.eup %1398 }
 0x8f6   :  { %v480_v13 = vadd.f32 1.0, %v1399_v12 }
 0x8f8   :  { %1400 = vrcp.f32 %v480_v13 }
 0x902   :  { %v1401_v14 = vpop.eup %1400 }
 0x903   :  { %v495_v20 = vsub.f32 1.0, %v1401_v14  ;;  %v501_v24 = vmul.f32 %v1401_v14, %v400_v4 }
 0x95b   :  { %v486_v15 = vpop.permute.xlu0 %485 }
 0x95c   :  { %v488_v16 = vmul.f32 %v1401_v14, %v486_v15 }
 0x95e   :  { %490 = vrot.lane.b32.xlu1 %v488_v16, %s1563_s27 }
 0x9d0   :  { %v491_v17 = vpop.permute.xlu1 %490 }
 0x9d1   :  { %v493_v18 = vadd.f32 %v491_v17, %v1674_v8 }
 0x9d3   :  { %1402 = vtanh.f32 %v493_v18 }
 0x9dd   :  { %v1403_v19 = vpop.eup %1402 }
 0x9de   :  { %497 = vrot.lane.b32.xlu0 %v1403_v19, %s1564_s3 }
 0xa50   :  { %v498_v22 = vpop.permute.xlu0 %497 }
 0xa51   :  { %v500_v25 = vmul.f32 %v498_v22, %v495_v20 }
 0xa53   :  { %v502_v26 = vadd.f32 %v501_v24, %v500_v25 }
 0xa55   :  { %504 = vrot.lane.b32.xlu1 %v502_v26, %s1564_s3 }
 0xac7   :  { %v1750_v27 = vpop.permute.xlu1 %504 }
 0xac8   :  { %1261 = vmatmul.mubr.msk.f32.vlgmr.msra.gmra.mrb[2].mxu0 %vm196_vm2, %v1750_v27 }
 0xac9   :  { %1351 = vmatpush3.bf16.msra.mxu0 %v1682_v21  ;;  %1282 = vmatprep.mubr.msk.f32.mxu0 %vm1561_vm0, %v1562_v1 }
 0xaca   :  { %1352 = vmatprep.subr.bf16.mxu0 %v1560_v0 }
 0xacd   :  { %1354 = vmatpush3.bf16.msra.mxu0 %v1685_v23 }
 0xace   :  { %1362 = vmatprep.subr.bf16.mxu0 %v1361_v60 }
 0xb9b   :  { %v574_v30 = vpop.f32.mrb[2].mxu0 }
 0xb9c   :  { %v585_v31 = vadd.f32 %v574_v30, %v1707_v29  ;;  %v1262_v32 = vpop.f32.mrb[3].mxu0  ;;  %v578_v33 = vadd.f32 %v574_v30, %v1674_v8 }
 0xb9e   :  { %587 = vrot.lane.b32.xlu0 %v585_v31, %s1563_s27  ;;  %v1146_v34 = vmul.f32 -1.442695, %v578_v33 }
 0xba0   :  { %1404 = vpow2.f32 %v1146_v34 }
 0xbaa   :  { %v1405_v35 = vpop.eup %1404 }
 0xbab   :  { %v582_v36 = vadd.f32 1.0, %v1405_v35 }
 0xbad   :  { %1406 = vrcp.f32 %v582_v36 }
 0xbb7   :  { %v1407_v37 = vpop.eup %1406 }
 0xbb8   :  { %v597_v43 = vsub.f32 1.0, %v1407_v37  ;;  %v603_v45 = vmul.f32 %v1407_v37, %v502_v26 }
 0xc10   :  { %v588_v38 = vpop.permute.xlu0 %587 }
 0xc11   :  { %v590_v39 = vmul.f32 %v1407_v37, %v588_v38 }
 0xc13   :  { %592 = vrot.lane.b32.xlu1 %v590_v39, %s1563_s27 }
 0xc85   :  { %v593_v40 = vpop.permute.xlu1 %592 }
 0xc86   :  { %v595_v41 = vadd.f32 %v593_v40, %v1674_v8 }
 0xc88   :  { %1408 = vtanh.f32 %v595_v41 }
 0xc92   :  { %v1409_v42 = vpop.eup %1408 }
 0xc93   :  { %599 = vrot.lane.b32.xlu0 %v1409_v42, %s1564_s3 }
 0xd05   :  { %v600_v44 = vpop.permute.xlu0 %599 }
 0xd06   :  { %v602_v46 = vmul.f32 %v600_v44, %v597_v43 }
 0xd08   :  { %v604_v47 = vadd.f32 %v603_v45, %v602_v46 }
 0xd0a   :  { %606 = vrot.lane.b32.xlu1 %v604_v47, %s1564_s3 }
 0xd7c   :  { %v607_v49 = vpop.permute.xlu1 %606 }
 0xd7d   :  { %1272 = vmatmul.mubr.msk.f32.vlgmr.msra.gmra.mrb[6].mxu1 %vm196_vm2, %v607_v49 }
 0xd7e   :  { %1357 = vmatpush3.bf16.msra.mxu1 %v1682_v21  ;;  %1293 = vmatprep.mubr.msk.f32.mxu1 %vm1561_vm0, %v1562_v1 }
 0xd7f   :  { %1358 = vmatprep.subr.bf16.mxu1 %v1560_v0 }
 0xd82   :  { %1360 = vmatpush3.bf16.msra.mxu1 %v1685_v23 }
 0xe50   :  { %v676_v50 = vpop.f32.mrb[6].mxu1 }
 0xe51   :  { %v687_v51 = vadd.f32 %v676_v50, %v1707_v29  ;;  %v1273_v52 = vpop.f32.mrb[7].mxu1  ;;  %v680_v53 = vadd.f32 %v676_v50, %v1674_v8  ;;  %v1153_v50 = vld [vmem:[%s1870_s6] ss:$0 sm:$0xff] }
 0xe53   :  { %689 = vrot.lane.b32.xlu0 %v687_v51, %s1563_s27  ;;  %v1148_v54 = vmul.f32 -1.442695, %v680_v53 }
 0xe55   :  { %1410 = vpow2.f32 %v1148_v54 }
 0xe5f   :  { %v1411_v55 = vpop.eup %1410 }
 0xe60   :  { %v684_v56 = vadd.f32 1.0, %v1411_v55 }
 0xe62   :  { %1412 = vrcp.f32 %v684_v56 }
 0xe6c   :  { %v1413_v21 = vpop.eup %1412 }
 0xe6d   :  { %v699_v62 = vsub.f32 1.0, %v1413_v21  ;;  %v705_v2 = vmul.f32 %v1413_v21, %v604_v47 }
 0xec5   :  { %v690_v57 = vpop.permute.xlu0 %689 }
 0xec6   :  { %v692_v1 = vmul.f32 %v1413_v21, %v690_v57 }
 0xec8   :  { %694 = vrot.lane.b32.xlu1 %v692_v1, %s1563_s27 }
 0xf3a   :  { %v695_v0 = vpop.permute.xlu1 %694 }
 0xf3b   :  { %v697_v23 = vadd.f32 %v695_v0, %v1674_v8 }
 0xf3d   :  { %1414 = vtanh.f32 %v697_v23 }
 0xf47   :  { %v1415_v61 = vpop.eup %1414 }
 0xf48   :  { %701 = vrot.lane.b32.xlu0 %v1415_v61, %s1564_s3 }
 0xfba   :  { %v702_v63 = vpop.permute.xlu0 %701 }
 0xfbb   :  { %v704_v3 = vmul.f32 %v702_v63, %v699_v62 }
 0xfbd   :  { %v706_v4 = vadd.f32 %v705_v2, %v704_v3 }
 0xfbf   :  { %708 = vrot.lane.b32.xlu1 %v706_v4, %s1564_s3 }
0x1031   :  { %v709_v10 = vpop.permute.xlu1 %708 }
0x1032   :  { %1283 = vmatmul.mubr.msk.f32.vlgmr.msra.gmra.mrb[4].mxu0 %vm196_vm2, %v709_v10 }
0x1033   :  { %1364 = vmatpush3.bf16.msra.mxu0 %v1361_v60  ;;  %1304 = vmatprep.mubr.msk.f32.mxu0 %vm196_vm2, %v1697_v28 }
0x1034   :  { %1366 = vmatprep.subr.bf16.mxu0 %v1365_v9 }
0x1037   :  { %1368 = vmatpush3.bf16.msra.mxu0 %v1365_v9 }
0x103a   :  { %1305 = vmatmul.mubr.msk.f32.vlgmr.msra.gmra.mrb[6].mxu0 %vm196_vm2, %v1716_v48 }
0x103b   :  { %1307 = vmatprep.mubr.msk.f32.mxu0 %vm196_vm2, %v1733_v5 }
0x103e   :  { %1308 = vmatmul.mubr.msk.f32.gmra.mrb[8].mxu0 %vm196_vm2, %v1750_v27 }
0x103f   :  { %1310 = vmatprep.mubr.msk.f32.mxu0 %vm196_vm2, %v607_v49 }
0x1042   :  { %1311 = vmatmul.mubr.msk.f32.gmra.mrb[10].mxu0 %vm196_vm2, %v709_v10 }
0x1105   :  { %v778_v11 = vpop.f32.mrb[4].mxu0 }
0x1106   :  { %v789_v12 = vadd.f32 %v778_v11, %v1707_v29  ;;  %v1284_v13 = vpop.f32.mrb[5].mxu0  ;;  %v782_v17 = vadd.f32 %v778_v11, %v1674_v8 }
0x1108   :  { %791 = vrot.lane.b32.xlu0 %v789_v12, %s1563_s27  ;;  %v1150_v18 = vmul.f32 -1.442695, %v782_v17 }
0x110a   :  { %1416 = vpow2.f32 %v1150_v18 }
0x110d   :  { %v1792_v28 = vpop.f32.mrb[6].mxu0 }
0x110e   :  { %v993_v14 = vpop.f32.mrb[7].mxu0  ;;  %v999_v59 = vadd.f32 %v1792_v28, %v1153_v50 }
0x110f   :  { %v994_v51 = vadd.f32 %v1153_v50, %v993_v14 }
0x1110   :  { %v1035_v61 = vsel %vm196_vm2, %v999_v59, -inf }
0x1111   :  { %v1309_v48 = vpop.f32.mrb[8].mxu0  ;;  %v1032_v53 = vsel %vm196_vm2, %v994_v51, -inf }
0x1112   :  { %v1003_v15 = vpop.f32.mrb[9].mxu0  ;;  %v1009_v54 = vadd.f32 %v1309_v48, %v1153_v50 }
0x1113   :  { %v1004_v52 = vadd.f32 %v1153_v50, %v1003_v15 }
0x1114   :  { %v1417_v19 = vpop.eup %1416 }
0x1115   :  { %v1312_v16 = vpop.f32.mrb[10].mxu0  ;;  %v786_v20 = vadd.f32 1.0, %v1417_v19  ;;  %v1038_v55 = vsel %vm196_vm2, %v1004_v52, -inf }
0x1116   :  { %v1794_v5 = vpop.f32.mrb[11].mxu0  ;;  %v1019_v56 = vadd.f32 %v1312_v16, %v1153_v50 }
0x1117   :  { %1418 = vrcp.f32 %v786_v20  ;;  %v1014_v60 = vadd.f32 %v1153_v50, %v1794_v5 }
0x1118   :  { %v1047_v21 = vsel %vm196_vm2, %v1019_v56, -inf }
0x1119   :  { %v1044_v62 = vsel %vm196_vm2, %v1014_v60, -inf }
0x1121   :  { %v1419_v22 = vpop.eup %1418 }
0x1122   :  { %v801_v31 = vsub.f32 1.0, %v1419_v22  ;;  %v807_v33 = vmul.f32 %v1419_v22, %v706_v4 }
0x117a   :  { %v792_v24 = vpop.permute.xlu0 %791 }
0x117b   :  { %v794_v25 = vmul.f32 %v1419_v22, %v792_v24 }
0x117d   :  { %796 = vrot.lane.b32.xlu1 %v794_v25, %s1563_s27 }
0x11ef   :  { %v797_v26 = vpop.permute.xlu1 %796 }
0x11f0   :  { %v799_v27 = vadd.f32 %v797_v26, %v1674_v8 }
0x11f2   :  { %1420 = vtanh.f32 %v799_v27 }
0x11fc   :  { %v1421_v30 = vpop.eup %1420 }
0x11fd   :  { %803 = vrot.lane.b32.xlu0 %v1421_v30, %s1564_s3 }
0x126f   :  { %v804_v32 = vpop.permute.xlu0 %803 }
0x1270   :  { %v806_v34 = vmul.f32 %v804_v32, %v801_v31 }
0x1272   :  { %v808_v35 = vadd.f32 %v807_v33, %v806_v34 }
0x1274   :  { %810 = vrot.lane.b32.xlu1 %v808_v35, %s1564_s3 }
0x12e6   :  { %v811_v36 = vpop.permute.xlu1 %810 }
0x12e7   :  { %1294 = vmatmul.mubr.msk.f32.vlgmr.msra.gmra.mrb[8].mxu1 %vm196_vm2, %v811_v36  ;;  %1313 = vmatprep.mubr.msk.f32.mxu0 %vm196_vm2, %v811_v36 }
0x13ba   :  { %v880_v37 = vpop.f32.mrb[8].mxu1 }
0x13bb   :  { %v891_v38 = vadd.f32 %v880_v37, %v1707_v29  ;;  %v1295_v39 = vpop.f32.mrb[9].mxu1  ;;  %v884_v40 = vadd.f32 %v880_v37, %v1674_v8 }
0x13bd   :  { %893 = vrot.lane.b32.xlu0 %v891_v38, %s1563_s27  ;;  %v1152_v41 = vmul.f32 -1.442695, %v884_v40 }
0x13bf   :  { %1422 = vpow2.f32 %v1152_v41 }
0x13c9   :  { %v1423_v42 = vpop.eup %1422 }
0x13ca   :  { %v888_v43 = vadd.f32 1.0, %v1423_v42 }
0x13cc   :  { %1424 = vrcp.f32 %v888_v43 }
0x13d6   :  { %v1425_v44 = vpop.eup %1424 }
0x13d7   :  { %v903_v57 = vsub.f32 1.0, %v1425_v44  ;;  %v909_v0 = vmul.f32 %v1425_v44, %v808_v35 }
0x142f   :  { %v894_v45 = vpop.permute.xlu0 %893 }
0x1430   :  { %v896_v46 = vmul.f32 %v1425_v44, %v894_v45 }
0x1432   :  { %898 = vrot.lane.b32.xlu1 %v896_v46, %s1563_s27 }
0x14a4   :  { %v899_v47 = vpop.permute.xlu1 %898 }
0x14a5   :  { %v901_v49 = vadd.f32 %v899_v47, %v1674_v8  ;;  %v1041_v8 = vsel %vm196_vm2, %v1009_v54, -inf }
0x14a7   :  { %1426 = vtanh.f32 %v901_v49 }
0x14b1   :  { %v1427_v29 = vpop.eup %1426 }
0x14b2   :  { %905 = vrot.lane.b32.xlu0 %v1427_v29, %s1564_s3 }
0x14d1   :  { %1033 = vmax.xlane.f32.xlu0 %v1032_v53 }
0x14d5   :  { %1039 = vmax.xlane.f32.xlu0 %v1038_v55 }
0x14d9   :  { %1042 = vmax.xlane.f32.xlu0 %v1041_v8 }
0x14dd   :  { %1048 = vmax.xlane.f32.xlu0 %v1047_v21 }
0x1524   :  { %v906_v1 = vpop.permute.xlu0 %905 }
0x1525   :  { %v908_v23 = vmul.f32 %v906_v1, %v903_v57 }
0x1527   :  { %v910_v58 = vadd.f32 %v909_v0, %v908_v23 }
0x1529   :  { %923 = vrot.lane.b32.xlu1 %v910_v58, %s1564_s3 }
0x154d   :  { %1036 = vmax.xlane.f32.xlu1 %v1035_v61 }
0x1551   :  { %1045 = vmax.xlane.f32.xlu1 %v1044_v62 }
0x155e   :  { %v1034_v2 = vpop.xlane.xlu0 %1033 }
0x155f   :  { %v1056_v9 = vsub.f32 %v994_v51, %v1034_v2 }
0x1561   :  { %v1064_v12 = vmul.f32 1.442695, %v1056_v9 }
0x1562   :  { %v1040_v3 = vpop.xlane.xlu0 %1039 }
0x1563   :  { %v1058_v13 = vsub.f32 %v1004_v52, %v1040_v3 }
0x1565   :  { %v1068_v16 = vmul.f32 1.442695, %v1058_v13 }
0x1566   :  { %v1043_v6 = vpop.xlane.xlu0 %1042 }
0x1567   :  { %v1059_v10 = vsub.f32 %v1009_v54, %v1043_v6 }
0x1569   :  { %v1070_v48 = vmul.f32 1.442695, %v1059_v10 }
0x156a   :  { %v1049_v28 = vpop.xlane.xlu0 %1048 }
0x156b   :  { %v1061_v15 = vsub.f32 %v1019_v56, %v1049_v28 }
0x156d   :  { %v1074_v17 = vmul.f32 1.442695, %v1061_v15 }
0x159b   :  { %v924_v63 = vpop.permute.xlu1 %923 }
0x159c   :  { %1314 = vmatmul.mubr.msk.f32.gmra.mrb[12].mxu0 %vm196_vm2, %v924_v63 }
0x15da   :  { %v1037_v4 = vpop.xlane.xlu1 %1036 }
0x15db   :  { %v1057_v7 = vsub.f32 %v999_v59, %v1037_v4 }
0x15dd   :  { %v1066_v11 = vmul.f32 1.442695, %v1057_v7 }
0x15de   :  { %v1046_v14 = vpop.xlane.xlu1 %1045 }
0x15df   :  { %1428 = vpow2.f32 %v1066_v11  ;;  %v1060_v5 = vsub.f32 %v1014_v60, %v1046_v14 }
0x15e0   :  { %1430 = vpow2.f32 %v1064_v12 }
0x15e1   :  { %1432 = vpow2.f32 %v1070_v48  ;;  %v1072_v18 = vmul.f32 1.442695, %v1060_v5 }
0x15e2   :  { %1434 = vpow2.f32 %v1068_v16 }
0x15e3   :  { %1436 = vpow2.f32 %v1074_v17 }
0x15e4   :  { %1438 = vpow2.f32 %v1072_v18 }
0x15e9   :  { %v1429_v26 = vpop.eup %1428 }
0x15ea   :  { %v1431_v30 = vpop.eup %1430  ;;  %v1083_v31 = vsel %vm196_vm2, %v1429_v26, 0.0 }
0x15eb   :  { %v1433_v32 = vpop.eup %1432  ;;  %v1080_v33 = vsel %vm196_vm2, %v1431_v30, 0.0 }
0x15ec   :  { %v1435_v34 = vpop.eup %1434  ;;  %v1089_v35 = vsel %vm196_vm2, %v1433_v32, 0.0 }
0x15ed   :  { %v1437_v36 = vpop.eup %1436  ;;  %v1086_v37 = vsel %vm196_vm2, %v1435_v34, 0.0 }
0x15ee   :  { %v1439_v38 = vpop.eup %1438  ;;  %v1095_v39 = vsel %vm196_vm2, %v1437_v36, 0.0 }
0x15ef   :  { %v1092_v40 = vsel %vm196_vm2, %v1439_v38, 0.0 }
0x166f   :  { %v1315_v19 = vpop.f32.mrb[12].mxu0 }
0x1670   :  { %v1029_v20 = vadd.f32 %v1315_v19, %v1153_v50  ;;  %v1023_v22 = vpop.f32.mrb[13].mxu0 }
0x1671   :  { %v1024_v24 = vadd.f32 %v1153_v50, %v1023_v22 }
0x1672   :  { %v1053_v25 = vsel %vm196_vm2, %v1029_v20, -inf }
0x1673   :  { %1054 = vmax.xlane.f32.xlu0 %v1053_v25  ;;  %v1050_v27 = vsel %vm196_vm2, %v1024_v24, -inf }
0x1674   :  { %1051 = vmax.xlane.f32.xlu1 %v1050_v27 }
0x1677   :  { %1084 = vadd.xlane.f32.xlu0 %v1083_v31 }
0x1678   :  { %1081 = vadd.xlane.f32.xlu1 %v1080_v33 }
0x167b   :  { %1090 = vadd.xlane.f32.xlu0 %v1089_v35 }
0x167c   :  { %1087 = vadd.xlane.f32.xlu1 %v1086_v37 }
0x167f   :  { %1096 = vadd.xlane.f32.xlu0 %v1095_v39 }
0x1680   :  { %1093 = vadd.xlane.f32.xlu1 %v1092_v40 }
0x1700   :  { %v1055_v41 = vpop.xlane.xlu0 %1054 }
0x1701   :  { %v1063_v42 = vsub.f32 %v1029_v20, %v1055_v41  ;;  %v1052_v43 = vpop.xlane.xlu1 %1051 }
0x1702   :  { %v1062_v44 = vsub.f32 %v1024_v24, %v1052_v43 }
0x1703   :  { %v1078_v45 = vmul.f32 1.442695, %v1063_v42 }
0x1704   :  { %v1076_v46 = vmul.f32 1.442695, %v1062_v44  ;;  %v1085_v47 = vpop.xlane.xlu0 %1084 }
0x1705   :  { %1440 = vpow2.f32 %v1078_v45  ;;  %v1082_v49 = vpop.xlane.xlu1 %1081 }
0x1706   :  { %1442 = vpow2.f32 %v1076_v46 }
0x1707   :  { %1444 = vrcp.f32 %v1085_v47 }
0x1708   :  { %1446 = vrcp.f32 %v1082_v49  ;;  %v1091_v29 = vpop.xlane.xlu0 %1090 }
0x1709   :  { %1448 = vrcp.f32 %v1091_v29  ;;  %v1088_v50 = vpop.xlane.xlu1 %1087 }
0x170a   :  { %1450 = vrcp.f32 %v1088_v50 }
0x170c   :  { %v1097_v51 = vpop.xlane.xlu0 %1096 }
0x170d   :  { %1452 = vrcp.f32 %v1097_v51  ;;  %v1094_v52 = vpop.xlane.xlu1 %1093 }
0x170e   :  { %1454 = vrcp.f32 %v1094_v52 }
0x170f   :  { %v1441_v53 = vpop.eup %1440 }
0x1710   :  { %v1443_v54 = vpop.eup %1442  ;;  %v1101_v55 = vsel %vm196_vm2, %v1441_v53, 0.0 }
0x1711   :  { %v1445_v56 = vpop.eup %1444  ;;  %1102 = vadd.xlane.f32.xlu0 %v1101_v55  ;;  %v1098_v8 = vsel %vm196_vm2, %v1443_v54, 0.0 }
0x1712   :  { %v1447_v21 = vpop.eup %1446  ;;  %v1113_v57 = vmul.f32 %v1445_v56, %v1429_v26  ;;  %1099 = vadd.xlane.f32.xlu1 %v1098_v8 }
0x1713   :  { %v1449_v1 = vpop.eup %1448  ;;  %v1112_v0 = vmul.f32 %v1447_v21, %v1431_v30 }
0x1714   :  { %v1451_v23 = vpop.eup %1450  ;;  %1121 = vst.msk [vmem:[%s1871_s7 + $0x8] sm:$0xff] %vm196_vm2, %v1113_v57  ;;  %v1115_v58 = vmul.f32 %v1449_v1, %v1433_v32 }
0x1715   :  { %1120 = vst.msk [vmem:[%s1871_s7] sm:$0xff] %vm196_vm2, %v1112_v0  ;;  %v1114_v59 = vmul.f32 %v1451_v23, %v1435_v34 }
0x1716   :  { %1123 = vst.msk [vmem:[%s1871_s7 + $0x18] sm:$0xff] %vm196_vm2, %v1115_v58 }
0x1717   :  { %v1453_v60 = vpop.eup %1452  ;;  %1122 = vst.msk [vmem:[%s1871_s7 + $0x10] sm:$0xff] %vm196_vm2, %v1114_v59 }
0x1718   :  { %v1455_v61 = vpop.eup %1454  ;;  %v1117_v62 = vmul.f32 %v1453_v60, %v1437_v36 }
0x1719   :  { %v1116_v63 = vmul.f32 %v1455_v61, %v1439_v38 }
0x171a   :  { %1125 = vst.msk [vmem:[%s1871_s7 + $0x28] sm:$0xff] %vm196_vm2, %v1117_v62 }
0x171b   :  { %1124 = vst.msk [vmem:[%s1871_s7 + $0x20] sm:$0xff] %vm196_vm2, %v1116_v63 }
0x179e   :  { %v1103_v2 = vpop.xlane.xlu0 %1102 }
0x179f   :  { %1456 = vrcp.f32 %v1103_v2  ;;  %v1100_v3 = vpop.xlane.xlu1 %1099 }
0x17a0   :  { %1458 = vrcp.f32 %v1100_v3 }
0x17a9   :  { %v1457_v4 = vpop.eup %1456 }
0x17aa   :  { %v1459_v6 = vpop.eup %1458  ;;  %v1119_v7 = vmul.f32 %v1457_v4, %v1441_v53 }
0x17ab   :  { %v1118_v9 = vmul.f32 %v1459_v6, %v1443_v54 }
0x17ac   :  { %1127 = vst.msk [vmem:[%s1871_s7 + $0x38] sm:$0xff] %vm196_vm2, %v1119_v7 }
0x17ad   :  { %1126 = vst.msk [vmem:[%s1871_s7 + $0x30] sm:$0xff] %vm196_vm2, %v1118_v9 }
0x17ae   :  { %1132 = vsyncpa [#allocation3], 1 }
0x17af   :  { %1133 = vsyncpa [#allocation5], 1 }
0x17b0   :  { %1134 = vsyncpa [#allocation8], 1 }

</bundles_post_ra>
